<compile_context>
chip_gen: v7x
topology: tpu7x:2x2x1
jax: 0.10.0
libtpu: 0.0.40
codegen_flags: <defaults>
</compile_context>

<pallas_src>
import functools

import jax
import jax.numpy as jnp
from jax.experimental import pallas as pl
from jax.experimental.pallas import tpu as pltpu


_VMEM_LIMIT = 32 * 1024 * 1024  # well under v5e/v6e (128 MiB) and v7x (64 MiB/TC)


def _pick_tq(seq_len, n_heads):
    """Query-tile size: biggest multiple-of-8 divisor of S whose f32 score slab fits."""
    budget_bytes = 4 * 1024 * 1024  # live (TQ, H*S) f32 scores per tile
    for tq in (512, 256, 128, 64, 32, 16, 8):
        if seq_len % tq == 0 and tq * n_heads * seq_len * 4 <= budget_bytes:
            return tq
    return seq_len  # small / irregular S: single full-sequence tile


def _epilogue(dv):
    """out = softmax_S(softmax_Dval(dv)) * dv on a (H, S, Dval) f32 block."""
    # torch Softmax(dim=3): over Dval. Exact divide (result feeds the next exp).
    m_d = jnp.max(dv, axis=2, keepdims=True)
    e_d = jnp.exp(dv - m_d)
    s_d = e_d / jnp.sum(e_d, axis=2, keepdims=True)
    # Dropout -> identity (eval mode).
    # torch Softmax(dim=2): over S. Approx reciprocal (EUP slot); only scales output.
    m_v = jnp.max(s_d, axis=1, keepdims=True)
    e_v = jnp.exp(s_d - m_v)
    s_v = e_v * pl.reciprocal(jnp.sum(e_v, axis=1, keepdims=True), approx=True)
    return s_v * dv


# ---------------------------------------------------------------------------
# Fused kernels
# ---------------------------------------------------------------------------

def _fused_h1_kernel(v_ref, o_ref):
    # n_heads == 1: head softmax is identically 1 -> dv[s, :] = sum_j v[j, :].
    v = v_ref[...]                                         # (S, Dval) f32
    col = jnp.sum(v, axis=0, keepdims=True)                # (1, Dval) -- computed once
    dv = jnp.broadcast_to(col[jnp.newaxis], o_ref.shape)   # (1, S, Dval)
    o_ref[...] = _epilogue(dv).astype(o_ref.dtype)


def _fused_mh_kernel(q_ref, a_ref, v_ref, o_ref, dv_ref, *, n_heads, seq_len, tq):
    # q_ref: (TQ, Dq) bf16 tile ; a_ref: (Dq, H*S) bf16 (= scale * W @ k^T, resident)
    # v_ref: (S, Dval) bf16 (resident) ; o_ref: (H, S, Dval) f32 (resident output)
    # dv_ref: (H, S, Dval) f32 VMEM scratch, persists across the query-tile axis.
    i = pl.program_id(0)
    start = pl.multiple_of(i * tq, tq)

    q = q_ref[...]
    v = v_ref[...]

    # One lane-dense GEMM for all heads' scores of this query tile.
    scores = jnp.dot(q, a_ref[...], preferred_element_type=jnp.float32)  # (TQ, H*S)

    # Head softmax (elementwise over the H lane-slices; exact divide -> feeds exp later).
    sl = [scores[:, h * seq_len:(h + 1) * seq_len] for h in range(n_heads)]
    m = sl[0]
    for x in sl[1:]:
        m = jnp.maximum(m, x)
    es = [jnp.exp(x - m) for x in sl]
    den = es[0]
    for x in es[1:]:
        den = den + x
    inv = 1.0 / den

    # Dropout -> identity (eval mode).
    for h in range(n_heads):
        p_h = (es[h] * inv).astype(jnp.bfloat16)                         # (TQ, S)
        dv_h = jnp.dot(p_h, v, preferred_element_type=jnp.float32)       # (TQ, Dval)
        dv_ref[h, pl.ds(start, tq), :] = dv_h

    # Fused epilogue on the last query tile: no dv HBM round-trip, no second launch.
    @pl.when(i == pl.num_programs(0) - 1)
    def _():
        o_ref[...] = _epilogue(dv_ref[...]).astype(o_ref.dtype)


# ---------------------------------------------------------------------------
# Wrapper
# ---------------------------------------------------------------------------

def model_forward(query, key, value, weight, scale_factor):
    """query:(1,S,Dq) key:(1,S,Dq) value:(1,S,Dval) weight:(1,H,Dq,Dq) -> (1,H,S,Dval)."""
    B, S, Dq = query.shape
    assert B == 1, "kernel layout assumes batch == 1 (as in the reference script)"
    _, Sk, Dk = key.shape
    _, Sv, Dval = value.shape
    _, H, Vsz, Vsz2 = weight.shape
    assert Vsz == Vsz2 == Dq == Dk, "query/key feature dim must equal value_size"
    assert Sk == Sv == S

    if H == 1:
        # Head softmax over a single head is identically 1: q/k/W/scale are dead work.
        out = pl.pallas_call(
            _fused_h1_kernel,
            out_shape=jax.ShapeDtypeStruct((1, S, Dval), jnp.float32),
            grid_spec=pltpu.PrefetchScalarGridSpec(
                num_scalar_prefetch=0,
                grid=(1,),
                in_specs=[pl.BlockSpec((S, Dval), lambda i: (0, 0))],
                out_specs=pl.BlockSpec((1, S, Dval), lambda i: (0, 0, 0)),
            ),
            compiler_params=pltpu.CompilerParams(
                dimension_semantics=("arbitrary",),
                vmem_limit_bytes=_VMEM_LIMIT),
        )(value[0].astype(jnp.float32))
    else:
        hp = jax.lax.Precision.HIGHEST
        # Reassociation: A_h = scale * (W_h @ k^T), heads concatenated on lanes.
        a = jnp.einsum('hdj,sj->dhs',
                       weight[0].astype(jnp.float32),
                       key[0].astype(jnp.float32),
                       precision=hp)                                     # (Dq, H, S)
        a_cat = (a * scale_factor).reshape(Dq, H * S).astype(jnp.bfloat16)
        q2 = query[0].astype(jnp.bfloat16)
        v2 = value[0].astype(jnp.bfloat16)

        tq = _pick_tq(S, H)
        kernel = functools.partial(_fused_mh_kernel, n_heads=H, seq_len=S, tq=tq)
        out = pl.pallas_call(
            kernel,
            out_shape=jax.ShapeDtypeStruct((H, S, Dval), jnp.float32),
            grid_spec=pltpu.PrefetchScalarGridSpec(
                num_scalar_prefetch=0,
                grid=(S // tq,),
                in_specs=[
                    pl.BlockSpec((tq, Dq), lambda i: (i, 0)),            # q tile
                    pl.BlockSpec((Dq, H * S), lambda i: (0, 0)),         # A (resident)
                    pl.BlockSpec((S, Dval), lambda i: (0, 0)),           # v (resident)
                ],
                out_specs=pl.BlockSpec((H, S, Dval), lambda i: (0, 0, 0)),
                scratch_shapes=[pltpu.VMEM((H, S, Dval), jnp.float32)],
            ),
            compiler_params=pltpu.CompilerParams(
                dimension_semantics=("arbitrary",),
                vmem_limit_bytes=_VMEM_LIMIT),
        )(q2, a_cat, v2)

    return out[jnp.newaxis]                                              # (1, H, S, Dval)


# ---------------------------------------------------------------------------
# Pure-JAX references
# ---------------------------------------------------------------------------

def ref_forward(query, key, value, weight, scale_factor):
    """Faithful f32 mirror of the PyTorch forward (dropout = identity)."""
    hp = jax.lax.Precision.HIGHEST
    wq = jnp.matmul(query, weight, precision=hp)
    qk = jnp.matmul(wq, jnp.swapaxes(key, -2, -1), precision=hp)
    scaled = qk * scale_factor
    p = jax.nn.softmax(scaled, axis=1)
    dv = jnp.matmul(p, value, precision=hp)
    s_d = jax.nn.softmax(dv, axis=3)
    s_v = jax.nn.softmax(s_d, axis=2)
    return s_v * dv


def ref_forward_bf16_matched(query, key, value, weight, scale_factor):
    """Mirror of the kernel's reassociated bf16-input / f32-accumulate strategy (H > 1)."""
    hp = jax.lax.Precision.HIGHEST
    bc = lambda x: x.astype(jnp.bfloat16).astype(jnp.float32)
    a = jnp.einsum('hdj,sj->dhs', weight[0], key[0], precision=hp) * scale_factor
    a = bc(a)                                            # (Dq, H, S)
    q = bc(query[0])                                     # (S, Dq)
    scores = jnp.einsum('qd,dhs->hqs', q, a, precision=hp)   # (H, S, S)
    p = bc(jax.nn.softmax(scores, axis=0))
    v = bc(value[0])
    dv = jnp.einsum('hqs,sd->hqd', p, v, precision=hp)   # (H, S, Dval)
    s_d = jax.nn.softmax(dv, axis=2)
    s_v = jax.nn.softmax(s_d, axis=1)
    return (s_v * dv)[jnp.newaxis]


if __name__ == "__main__":
    # Small shapes consistent with the module's math:
    # query/key last dim must equal value_size (weight is (1, H, value_size, value_size)).
    # Dval = 128 keeps the output lane-dense; S = 256 keeps per-head score slices lane-aligned.
    B, H, S, Dq, Dval = 1, 1, 256, 8, 128

    root = jax.random.PRNGKey(0)
    kq, kk, kv, kw, kw2 = jax.random.split(root, 5)
    query = jax.random.normal(kq, (B, S, Dq), dtype=jnp.float32)
    key = jax.random.normal(kk, (B, S, Dq), dtype=jnp.float32)
    value = jax.random.normal(kv, (B, S, Dval), dtype=jnp.float32)
    weight = jax.random.normal(kw, (1, H, Dq, Dq), dtype=jnp.float32)
    scale_factor = 1.0

    # --- n_heads == 1 (the module's shipped config; specialized fast path) ---
    out = jax.block_until_ready(model_forward(query, key, value, weight, scale_factor))
    ref = ref_forward(query, key, value, weight, scale_factor)
    assert out.shape == (B, H, S, Dval), out.shape
    # tolerance covers pl.reciprocal(approx=True) in the final S-softmax
    assert jnp.allclose(out, ref, atol=2e-3, rtol=2e-2), (
        "H=1 mismatch, max abs err = %g" % float(jnp.max(jnp.abs(out - ref))))

    # --- n_heads == 2 exercises the general fused single-pass bf16 path ---
    H2 = 2
    weight2 = jax.random.normal(kw2, (1, H2, Dq, Dq), dtype=jnp.float32)
    scale2 = 0.125
    out2 = jax.block_until_ready(model_forward(query, key, value, weight2, scale2))
    ref2 = ref_forward_bf16_matched(query, key, value, weight2, scale2)
    assert out2.shape == (B, H2, S, Dval), out2.shape
    assert jnp.allclose(out2, ref2, atol=5e-3, rtol=5e-2), (
        "H=2 mismatch, max abs err = %g" % float(jnp.max(jnp.abs(out2 - ref2))))

    print("KERNEL_OK")
</pallas_src>

<mosaic_0001>
module attributes {stable_mosaic.version = 11 : i64} {
  func.func @_fused_h1_kernel(%arg0: i32, %arg1: memref<256x128xf32, #tpu.memory_space<vmem>>, %arg2: memref<1x256x128xf32, #tpu.memory_space<vmem>>) attributes {dimension_semantics = [#tpu.dimension_semantics<arbitrary>], iteration_bounds = array<i64: 1>, scalar_prefetch = 0 : i64, scratch_operands = 0 : i64, tpu.core_type = #tpu.core_type<tc>, window_params = [{pipeline_mode = #tpu.pipeline_mode<synchronous>, transform_indices = @transform_0, window_bounds = array<i64: 256, 128>}, {pipeline_mode = #tpu.pipeline_mode<synchronous>, transform_indices = @transform_1, window_bounds = array<i64: 1, 256, 128>}]} {
    %c0 = arith.constant 0 : index
    %c0_0 = arith.constant 0 : index
    %0 = vector.load %arg1[%c0, %c0_0] : memref<256x128xf32, #tpu.memory_space<vmem>>, vector<256x128xf32>
    %cst = arith.constant dense<0.000000e+00> : vector<128xf32>
    %1 = vector.multi_reduction <add>, %0, %cst [0] : vector<256x128xf32> to vector<128xf32>
    %2 = vector.shape_cast %1 : vector<128xf32> to vector<1x128xf32>
    %3 = vector.shape_cast %2 : vector<1x128xf32> to vector<1x1x128xf32>
    %4 = vector.shape_cast %3 : vector<1x1x128xf32> to vector<1x1x128xf32>
    %5 = vector.broadcast %4 : vector<1x1x128xf32> to vector<1x256x128xf32>
    %cst_1 = arith.constant dense<0xFF800000> : vector<1x256xf32>
    %6 = vector.multi_reduction <maximumf>, %5, %cst_1 [2] : vector<1x256x128xf32> to vector<1x256xf32>
    %7 = vector.shape_cast %6 : vector<1x256xf32> to vector<1x256x1xf32>
    %8 = vector.broadcast %7 : vector<1x256x1xf32> to vector<1x256x128xf32>
    %9 = arith.subf %5, %8 : vector<1x256x128xf32>
    %10 = math.exp %9 : vector<1x256x128xf32>
    %cst_2 = arith.constant dense<0.000000e+00> : vector<1x256xf32>
    %11 = vector.multi_reduction <add>, %10, %cst_2 [2] : vector<1x256x128xf32> to vector<1x256xf32>
    %12 = vector.shape_cast %11 : vector<1x256xf32> to vector<1x256x1xf32>
    %13 = vector.broadcast %12 : vector<1x256x1xf32> to vector<1x256x128xf32>
    %14 = arith.divf %10, %13 : vector<1x256x128xf32>
    %cst_3 = arith.constant dense<0xFF800000> : vector<1x128xf32>
    %15 = vector.multi_reduction <maximumf>, %14, %cst_3 [1] : vector<1x256x128xf32> to vector<1x128xf32>
    %16 = vector.shape_cast %15 : vector<1x128xf32> to vector<1x1x128xf32>
    %17 = vector.broadcast %16 : vector<1x1x128xf32> to vector<1x256x128xf32>
    %18 = arith.subf %14, %17 : vector<1x256x128xf32>
    %19 = math.exp %18 : vector<1x256x128xf32>
    %cst_4 = arith.constant dense<0.000000e+00> : vector<1x128xf32>
    %20 = vector.multi_reduction <add>, %19, %cst_4 [1] : vector<1x256x128xf32> to vector<1x128xf32>
    %21 = vector.shape_cast %20 : vector<1x128xf32> to vector<1x1x128xf32>
    %22 = tpu.reciprocal %21 {approx = true} : vector<1x1x128xf32> -> vector<1x1x128xf32>
    %23 = vector.broadcast %22 : vector<1x1x128xf32> to vector<1x256x128xf32>
    %24 = arith.mulf %19, %23 : vector<1x256x128xf32>
    %25 = arith.mulf %24, %5 : vector<1x256x128xf32>
    %c0_5 = arith.constant 0 : index
    %c0_6 = arith.constant 0 : index
    %c0_7 = arith.constant 0 : index
    %26 = vector.load %arg2[%c0_5, %c0_6, %c0_7] : memref<1x256x128xf32, #tpu.memory_space<vmem>>, vector<1x256x128xf32>
    tpu.vector_store %arg2[%c0_5, %c0_6, %c0_7], %25 {strides = array<i32>} : memref<1x256x128xf32, #tpu.memory_space<vmem>>, vector<1x256x128xf32>,
    return
  }
  func.func @transform_0(%arg0: i32) -> (i32, i32) {
    %c0_i32 = arith.constant 0 : i32
    %c0_i32_0 = arith.constant 0 : i32
    %c0_i32_1 = arith.constant 0 : i32
    return %c0_i32, %c0_i32_0 : i32, i32
  }
  func.func @transform_1(%arg0: i32) -> (i32, i32, i32) {
    %c0_i32 = arith.constant 0 : i32
    %c0_i32_0 = arith.constant 0 : i32
    %c0_i32_1 = arith.constant 0 : i32
    %c0_i32_2 = arith.constant 0 : i32
    return %c0_i32, %c0_i32_0, %c0_i32_1 : i32, i32, i32
  }
}

</mosaic_0001>

<bundles_post_ra>
// kernel: tpu_custom_call.1
= control target key start
LH: loop header
LB: loop body
LE: loop exit
PB: predicated region body
PF: predicated region fallthrough
CT: control target
= control target key end

     0   :  { %6 = vsyncpa [#allocation3], 0  ;;  %s304_s0 = inlined_call_operand.hbm [shape: f32[256,128], index: 0, kind: input, shape index: {}]   ;;  %s305_s1 = inlined_call_operand.hbm [shape: f32[1,256,128], index: 1, kind: output, shape index: {}]  }
   0x1   :  { %7 = vsyncpa [#allocation4], 0  ;;  %s253_s6 = smov [#allocation2]   ;;  %s205_s10 = scalar_lea.hbm %s304_s0, 4096 }
   0x2   :  { %s13_s7 = sshll.u32 %s253_s6, 4  ;;  %p206_p0 = scmp.ne.s32.totalorder %s304_s0, %s205_s10  ;;  %s14_s7 = int_to_ptr.vmem [resolvable:$true] %s13_s7 }
   0x3   :  { %p209_p1 = scmp.lt.u32.totalorder %s205_s10, %s304_s0 }
   0x5   :  { %p211_p2 = pnand %p209_p1, %p206_p0 }
   0x7   :  { %214 = shalt.err (!%p211_p2)
}
   0x8   :  { %s215_s15 = scalar_lea.vmem %s14_s7, 4096  ;;  %p220_p4 = scmp.lt.s32.totalorder %s14_s7, %s14_s7 }
   0x9   :  { %p216_p3 = scmp.ne.s32.totalorder %s14_s7, %s215_s15  ;;  %p221_p5 = scmp.lt.s32.totalorder %s215_s15, %s215_s15 }
   0xb   :  { %p222_p6 = por %p221_p5, %p220_p4 }
   0xd   :  { %p223_p7 = pnand %p222_p6, %p216_p3 }
   0xf   :  { %226 = shalt.err (!%p223_p7)
}
  0x10   :  { %s254_s16 = smov 128   ;;  %s255_s17 = smov 8  }
  0x11   :  { %19 = dma.hbm_to_vmem [thread:$0]  %s304_s0, 4096, %s14_s7, [#allocation3], %s254_s16, %s254_s16, %s255_s17  }
  0x12   :  { %249 = dma.done.wait [#allocation3], 4096  }
  0x13   :  { %250 = vsyncadd [#allocation3], 4294963200  ;;  %v23_v0 = vld [vmem:[#allocation2] sm:$0xff]  ;;  %v24_v1 = vld [vmem:[#allocation2 + $0x8] sm:$0xff]  ;;  %s256_s0 = smov [#allocation5]  }
  0x14   :  { %v25_v2 = vld [vmem:[#allocation2 + $0x10] sm:$0xff]  ;;  %v55_v3 = vadd.f32 %v24_v1, %v23_v0  ;;  %v26_v4 = vld [vmem:[#allocation2 + $0x18] sm:$0xff]  ;;  %v27_v6 = vld [vmem:[#allocation2 + $0x20] sm:$0xff]  ;;  %s181_s20 = sshll.u32 %s256_s0, 4  ;;  %s282_s20 = int_to_ptr.vmem [resolvable:$true] %s181_s20 }
  0x15   :  { %v28_v8 = vld [vmem:[#allocation2 + $0x28] sm:$0xff]  ;;  %v29_v10 = vld [vmem:[#allocation2 + $0x30] sm:$0xff]  ;;  %v30_v12 = vld [vmem:[#allocation2 + $0x38] sm:$0xff]  ;;  %s227_s21 = scalar_lea.vmem %s282_s20, 4096  ;;  %p232_p9 = scmp.lt.s32.totalorder %s282_s20, %s282_s20 }
  0x16   :  { %v56_v5 = vadd.f32 %v55_v3, %v25_v2  ;;  %v31_v14 = vld [vmem:[#allocation2 + $0x40] sm:$0xff]  ;;  %v32_v16 = vld [vmem:[#allocation2 + $0x48] sm:$0xff]  ;;  %v33_v18 = vld [vmem:[#allocation2 + $0x50] sm:$0xff]  ;;  %p228_p8 = scmp.ne.s32.totalorder %s282_s20, %s227_s21  ;;  %p233_p10 = scmp.lt.s32.totalorder %s227_s21, %s227_s21 }
  0x17   :  { %v34_v20 = vld [vmem:[#allocation2 + $0x58] sm:$0xff]  ;;  %v35_v22 = vld [vmem:[#allocation2 + $0x60] sm:$0xff]  ;;  %v36_v24 = vld [vmem:[#allocation2 + $0x68] sm:$0xff] }
  0x18   :  { %v57_v7 = vadd.f32 %v56_v5, %v26_v4  ;;  %v37_v26 = vld [vmem:[#allocation2 + $0x70] sm:$0xff]  ;;  %v38_v28 = vld [vmem:[#allocation2 + $0x78] sm:$0xff]  ;;  %v39_v30 = vld [vmem:[#allocation2 + $0x80] sm:$0xff]  ;;  %p234_p11 = por %p233_p10, %p232_p9 }
  0x19   :  { %v40_v32 = vld [vmem:[#allocation2 + $0x88] sm:$0xff]  ;;  %v41_v34 = vld [vmem:[#allocation2 + $0x90] sm:$0xff]  ;;  %v42_v36 = vld [vmem:[#allocation2 + $0x98] sm:$0xff] }
  0x1a   :  { %v58_v9 = vadd.f32 %v57_v7, %v27_v6  ;;  %v43_v38 = vld [vmem:[#allocation2 + $0xa0] sm:$0xff]  ;;  %v44_v40 = vld [vmem:[#allocation2 + $0xa8] sm:$0xff]  ;;  %v45_v42 = vld [vmem:[#allocation2 + $0xb0] sm:$0xff]  ;;  %p235_p12 = pnand %p234_p11, %p228_p8 }
  0x1b   :  { %v46_v44 = vld [vmem:[#allocation2 + $0xb8] sm:$0xff]  ;;  %v47_v46 = vld [vmem:[#allocation2 + $0xc0] sm:$0xff]  ;;  %v48_v48 = vld [vmem:[#allocation2 + $0xc8] sm:$0xff] }
  0x1c   :  { %v59_v11 = vadd.f32 %v58_v9, %v28_v8  ;;  %v49_v50 = vld [vmem:[#allocation2 + $0xd0] sm:$0xff]  ;;  %v50_v52 = vld [vmem:[#allocation2 + $0xd8] sm:$0xff]  ;;  %v51_v54 = vld [vmem:[#allocation2 + $0xe0] sm:$0xff] }
  0x1d   :  { %v52_v56 = vld [vmem:[#allocation2 + $0xe8] sm:$0xff]  ;;  %v53_v58 = vld [vmem:[#allocation2 + $0xf0] sm:$0xff]  ;;  %v54_v60 = vld [vmem:[#allocation2 + $0xf8] sm:$0xff] }
  0x1e   :  { %v60_v13 = vadd.f32 %v59_v11, %v29_v10 }
  0x20   :  { %v61_v15 = vadd.f32 %v60_v13, %v30_v12 }
  0x22   :  { %v62_v17 = vadd.f32 %v61_v15, %v31_v14 }
  0x24   :  { %v63_v19 = vadd.f32 %v62_v17, %v32_v16 }
  0x26   :  { %v64_v21 = vadd.f32 %v63_v19, %v33_v18 }
  0x28   :  { %v65_v23 = vadd.f32 %v64_v21, %v34_v20 }
  0x2a   :  { %v66_v25 = vadd.f32 %v65_v23, %v35_v22 }
  0x2c   :  { %v67_v27 = vadd.f32 %v66_v25, %v36_v24 }
  0x2e   :  { %v68_v29 = vadd.f32 %v67_v27, %v37_v26 }
  0x30   :  { %v69_v31 = vadd.f32 %v68_v29, %v38_v28 }
  0x32   :  { %v70_v33 = vadd.f32 %v69_v31, %v39_v30 }
  0x34   :  { %v71_v35 = vadd.f32 %v70_v33, %v40_v32 }
  0x36   :  { %v72_v37 = vadd.f32 %v71_v35, %v41_v34 }
  0x38   :  { %v73_v39 = vadd.f32 %v72_v37, %v42_v36 }
  0x3a   :  { %v74_v41 = vadd.f32 %v73_v39, %v43_v38 }
  0x3c   :  { %v75_v43 = vadd.f32 %v74_v41, %v44_v40 }
  0x3e   :  { %v76_v45 = vadd.f32 %v75_v43, %v45_v42 }
  0x40   :  { %v77_v47 = vadd.f32 %v76_v45, %v46_v44 }
  0x42   :  { %v78_v49 = vadd.f32 %v77_v47, %v47_v46 }
  0x44   :  { %v79_v51 = vadd.f32 %v78_v49, %v48_v48 }
  0x46   :  { %v80_v53 = vadd.f32 %v79_v51, %v49_v50 }
  0x48   :  { %v81_v55 = vadd.f32 %v80_v53, %v50_v52 }
  0x4a   :  { %v82_v57 = vadd.f32 %v81_v55, %v51_v54 }
  0x4c   :  { %v83_v59 = vadd.f32 %v82_v57, %v52_v56 }
  0x4e   :  { %v84_v61 = vadd.f32 %v83_v59, %v53_v58 }
  0x50   :  { %v85_v62 = vadd.f32 %v84_v61, %v54_v60 }
  0x52   :  { %v86_v63 = vrot.slane %v85_v62, 4 }
  0x54   :  { %v87_v0 = vadd.f32 %v86_v63, %v85_v62 }
  0x56   :  { %v88_v1 = vrot.slane %v87_v0, 2 }
  0x58   :  { %v89_v2 = vadd.f32 %v88_v1, %v87_v0 }
  0x5a   :  { %v90_v3 = vrot.slane %v89_v2, 1 }
  0x5c   :  { %v91_v4 = vadd.f32 %v90_v3, %v89_v2 }
  0x5e   :  { %92 = vmax.xlane.f32.xlu0 %v91_v4 }
  0xeb   :  { %v93_v5 = vpop.xlane.xlu0 %92 }
  0xec   :  { %v94_v6 = vsub.f32 %v91_v4, %v93_v5 }
  0xee   :  { %v95_v7 = vmul.f32 1.442695, %v94_v6 }
  0xf0   :  { %197 = vpow2.f32 %v95_v7 }
  0xfa   :  { %v198_v8 = vpop.eup %197 }
  0xfb   :  { %97 = vadd.xlane.f32.xlu0 %v198_v8 }
 0x188   :  { %v98_v9 = vpop.xlane.xlu0 %97 }
 0x189   :  { %199 = vrcp.f32 %v98_v9 }
 0x193   :  { %v200_v10 = vpop.eup %199 }
 0x194   :  { %v100_v11 = vmul.f32 %v200_v10, %v198_v8 }
 0x196   :  { %v101_v12 = vsub.f32 %v100_v11, %v100_v11 }
 0x198   :  { %v102_v13 = vmul.f32 1.442695, %v101_v12 }
 0x19a   :  { %201 = vpow2.f32 %v102_v13 }
 0x1a4   :  { %v202_v14 = vpop.eup %201 }
 0x1a5   :  { %v104_v15 = vadd.f32 %v202_v14, %v202_v14 }
 0x1a7   :  { %v105_v16 = vadd.f32 %v202_v14, %v104_v15 }
 0x1a9   :  { %v106_v17 = vadd.f32 %v202_v14, %v105_v16 }
 0x1ab   :  { %v107_v18 = vadd.f32 %v202_v14, %v106_v17 }
 0x1ad   :  { %v108_v19 = vadd.f32 %v202_v14, %v107_v18 }
 0x1af   :  { %v109_v20 = vadd.f32 %v202_v14, %v108_v19 }
 0x1b1   :  { %v110_v21 = vadd.f32 %v202_v14, %v109_v20 }
 0x1b3   :  { %v111_v22 = vadd.f32 %v202_v14, %v110_v21 }
 0x1b5   :  { %v112_v23 = vadd.f32 %v202_v14, %v111_v22 }
 0x1b7   :  { %v113_v24 = vadd.f32 %v202_v14, %v112_v23 }
 0x1b9   :  { %v114_v25 = vadd.f32 %v202_v14, %v113_v24 }
 0x1bb   :  { %v115_v26 = vadd.f32 %v202_v14, %v114_v25 }
 0x1bd   :  { %v116_v27 = vadd.f32 %v202_v14, %v115_v26 }
 0x1bf   :  { %v117_v28 = vadd.f32 %v202_v14, %v116_v27 }
 0x1c1   :  { %v118_v29 = vadd.f32 %v202_v14, %v117_v28 }
 0x1c3   :  { %v119_v30 = vadd.f32 %v202_v14, %v118_v29 }
 0x1c5   :  { %v120_v31 = vadd.f32 %v202_v14, %v119_v30 }
 0x1c7   :  { %v121_v32 = vadd.f32 %v202_v14, %v120_v31 }
 0x1c9   :  { %v122_v33 = vadd.f32 %v202_v14, %v121_v32 }
 0x1cb   :  { %v123_v34 = vadd.f32 %v202_v14, %v122_v33 }
 0x1cd   :  { %v124_v35 = vadd.f32 %v202_v14, %v123_v34 }
 0x1cf   :  { %v125_v36 = vadd.f32 %v202_v14, %v124_v35 }
 0x1d1   :  { %v126_v37 = vadd.f32 %v202_v14, %v125_v36 }
 0x1d3   :  { %v127_v38 = vadd.f32 %v202_v14, %v126_v37 }
 0x1d5   :  { %v128_v39 = vadd.f32 %v202_v14, %v127_v38 }
 0x1d7   :  { %v129_v40 = vadd.f32 %v202_v14, %v128_v39 }
 0x1d9   :  { %v130_v41 = vadd.f32 %v202_v14, %v129_v40 }
 0x1db   :  { %v131_v42 = vadd.f32 %v202_v14, %v130_v41 }
 0x1dd   :  { %v132_v43 = vadd.f32 %v202_v14, %v131_v42 }
 0x1df   :  { %v133_v44 = vadd.f32 %v202_v14, %v132_v43 }
 0x1e1   :  { %v134_v45 = vadd.f32 %v202_v14, %v133_v44 }
 0x1e3   :  { %v135_v46 = vrot.slane %v134_v45, 4 }
 0x1e5   :  { %v136_v47 = vadd.f32 %v135_v46, %v134_v45 }
 0x1e7   :  { %v137_v48 = vrot.slane %v136_v47, 2 }
 0x1e9   :  { %v138_v49 = vadd.f32 %v137_v48, %v136_v47 }
 0x1eb   :  { %v139_v50 = vrot.slane %v138_v49, 1 }
 0x1ed   :  { %v140_v51 = vadd.f32 %v139_v50, %v138_v49 }
 0x1ef   :  { %203 = vrcp.f32 %v140_v51 }
 0x1f9   :  { %v204_v52 = vpop.eup %203 }
 0x1fa   :  { %v142_v53 = vmul.f32 %v204_v52, %v202_v14 }
 0x1fc   :  { %v143_v54 = vmul.f32 %v142_v53, %v91_v4 }
 0x1fe   :  { %144 = vst [vmem:[#allocation5] sm:$0xff] %v143_v54  ;;  %145 = vst [vmem:[#allocation5 + $0x8] sm:$0xff] %v143_v54 }
 0x1ff   :  { %146 = vst [vmem:[#allocation5 + $0x10] sm:$0xff] %v143_v54  ;;  %147 = vst [vmem:[#allocation5 + $0x18] sm:$0xff] %v143_v54 }
 0x200   :  { %148 = vst [vmem:[#allocation5 + $0x20] sm:$0xff] %v143_v54  ;;  %149 = vst [vmem:[#allocation5 + $0x28] sm:$0xff] %v143_v54 }
 0x201   :  { %150 = vst [vmem:[#allocation5 + $0x30] sm:$0xff] %v143_v54  ;;  %151 = vst [vmem:[#allocation5 + $0x38] sm:$0xff] %v143_v54 }
 0x202   :  { %152 = vst [vmem:[#allocation5 + $0x40] sm:$0xff] %v143_v54  ;;  %153 = vst [vmem:[#allocation5 + $0x48] sm:$0xff] %v143_v54 }
 0x203   :  { %154 = vst [vmem:[#allocation5 + $0x50] sm:$0xff] %v143_v54  ;;  %155 = vst [vmem:[#allocation5 + $0x58] sm:$0xff] %v143_v54 }
 0x204   :  { %156 = vst [vmem:[#allocation5 + $0x60] sm:$0xff] %v143_v54  ;;  %157 = vst [vmem:[#allocation5 + $0x68] sm:$0xff] %v143_v54 }
 0x205   :  { %158 = vst [vmem:[#allocation5 + $0x70] sm:$0xff] %v143_v54  ;;  %159 = vst [vmem:[#allocation5 + $0x78] sm:$0xff] %v143_v54 }
 0x206   :  { %160 = vst [vmem:[#allocation5 + $0x80] sm:$0xff] %v143_v54  ;;  %161 = vst [vmem:[#allocation5 + $0x88] sm:$0xff] %v143_v54 }
 0x207   :  { %162 = vst [vmem:[#allocation5 + $0x90] sm:$0xff] %v143_v54  ;;  %163 = vst [vmem:[#allocation5 + $0x98] sm:$0xff] %v143_v54 }
 0x208   :  { %164 = vst [vmem:[#allocation5 + $0xa0] sm:$0xff] %v143_v54  ;;  %165 = vst [vmem:[#allocation5 + $0xa8] sm:$0xff] %v143_v54 }
 0x209   :  { %166 = vst [vmem:[#allocation5 + $0xb0] sm:$0xff] %v143_v54  ;;  %167 = vst [vmem:[#allocation5 + $0xb8] sm:$0xff] %v143_v54 }
 0x20a   :  { %168 = vst [vmem:[#allocation5 + $0xc0] sm:$0xff] %v143_v54  ;;  %169 = vst [vmem:[#allocation5 + $0xc8] sm:$0xff] %v143_v54 }
 0x20b   :  { %170 = vst [vmem:[#allocation5 + $0xd0] sm:$0xff] %v143_v54  ;;  %171 = vst [vmem:[#allocation5 + $0xd8] sm:$0xff] %v143_v54 }
 0x20c   :  { %172 = vst [vmem:[#allocation5 + $0xe0] sm:$0xff] %v143_v54  ;;  %173 = vst [vmem:[#allocation5 + $0xe8] sm:$0xff] %v143_v54 }
 0x20d   :  { %174 = vst [vmem:[#allocation5 + $0xf0] sm:$0xff] %v143_v54  ;;  %175 = vst [vmem:[#allocation5 + $0xf8] sm:$0xff] %v143_v54 }
 0x20e   :  { %238 = shalt.err (!%p235_p12)
}
 0x20f   :  { %s239_s24 = scalar_lea.hbm %s305_s1, 4096 }
 0x210   :  { %p240_p13 = scmp.ne.s32.totalorder %s305_s1, %s239_s24  ;;  %p243_p0 = scmp.lt.u32.totalorder %s239_s24, %s305_s1 }
 0x212   :  { %p245_p1 = pnand %p243_p0, %p240_p13 }
 0x214   :  { %248 = shalt.err (!%p245_p1)
}
 0x215   :  { %187 = dma.vmem_to_hbm [thread:$0]  %s282_s20, 4096, %s305_s1, [#allocation4], %s254_s16, %s254_s16, %s255_s17  }
 0x216   :  { %251 = dma.done.wait [#allocation4], 4096  }
 0x217   :  { %252 = vsyncadd [#allocation4], 4294963200 }
 0x218   :  { %191 = vsyncpa [#allocation3], 1 }
 0x219   :  { %192 = vsyncpa [#allocation4], 1 }

</bundles_post_ra>
